<compile_context>
chip_gen: v6e
topology: v6e:2x2x1
jax: 0.10.0
libtpu: 0.0.40
codegen_flags: <defaults>
</compile_context>

<pallas_src>
import functools

import jax
import jax.numpy as jnp
from jax.experimental import pallas as pl
from jax.experimental.pallas import tpu as pltpu

LN_EPS = 1e-5
_NEG_INF = -1e30  # finite "-inf" for padded logit lanes (exp underflows to 0)


def _round_up(x, m):
    return ((x + m - 1) // m) * m


def _cdiv(a, b):
    return (a + b - 1) // b


def _layernorm(x, gamma, beta):
    # PyTorch LayerNorm: biased variance over the last dim, all in f32.
    mean = jnp.mean(x, axis=-1, keepdims=True)
    var = jnp.mean((x - mean) ** 2, axis=-1, keepdims=True)
    inv = jax.lax.rsqrt(var + LN_EPS)
    return (x - mean) * inv * gamma + beta


def _mixture_kernel(x_ref,
                    w1_ref, b1_ref, g1_ref, be1_ref,
                    w2_ref, b2_ref, g2_ref, be2_ref,
                    w3_ref, b3_ref,
                    out_ref):
    n_out = out_ref.shape[-1]

    # ---- block 1: fc1 -> LayerNorm -> ReLU (bf16 MXU inputs, f32 acc) ------
    x = x_ref[...].astype(w1_ref.dtype)            # in-kernel bf16 cast
    h = jnp.dot(x, w1_ref[...], preferred_element_type=jnp.float32)
    h = _layernorm(h + b1_ref[...], g1_ref[...], be1_ref[...])
    h = jnp.maximum(h, 0.0)

    # TODO(synk): MC-dropout / training-mode dropout not implemented; the
    # eval-mode forward has dropout as identity.
    h_bf16 = h.astype(w2_ref.dtype)                # fc2 operand AND residual

    # ---- block 2: fc2 -> LayerNorm -> ReLU -> +residual ---------------------
    h2 = jnp.dot(h_bf16, w2_ref[...], preferred_element_type=jnp.float32)
    h2 = _layernorm(h2 + b2_ref[...], g2_ref[...], be2_ref[...])
    h2 = jnp.maximum(h2, 0.0) + h_bf16.astype(jnp.float32)

    # ---- head: fc3 -> softmax(dim=-1) ---------------------------------------
    logits = jnp.dot(h2.astype(w3_ref.dtype), w3_ref[...],
                     preferred_element_type=jnp.float32) + b3_ref[...]
    m = jnp.max(logits, axis=-1, keepdims=True)
    e = jnp.exp(logits - m)
    denom = jnp.sum(e, axis=-1, keepdims=True)
    p = e / denom                                  # exact: rows sum to 1
    out_ref[...] = p[:, :n_out].astype(out_ref.dtype)


def _default_vmem_limit_bytes():
    """Generation-aware scoped-VMEM limit (v5e/v6e: ~96 MiB, v7x: ~48 MiB)."""
    try:
        info = pltpu.get_tpu_info()
        cap = getattr(info, "vmem_capacity_bytes", None)
        if cap:
            return int(min(cap * 3 // 4, 96 * 1024 * 1024))
    except Exception:
        pass
    return 48 * 1024 * 1024  # safe on every generation


def prepare_params(params):
    """One-time weight prep (outside the jitted hot path): bf16 weights,
    lane-padded w3. Biases / LayerNorm params stay f32."""
    N = params["w3"].shape[1]
    N_pad = _round_up(N, 128)
    return dict(
        w1=params["w1"].astype(jnp.bfloat16),
        b1=params["b1"], g1=params["g1"], be1=params["be1"],
        w2=params["w2"].astype(jnp.bfloat16),
        b2=params["b2"], g2=params["g2"], be2=params["be2"],
        w3=jnp.pad(params["w3"], ((0, 0), (0, N_pad - N))).astype(jnp.bfloat16),
        b3=params["b3"],       # kept unpadded f32; padded (tiny) inside the jit
    )


@functools.partial(jax.jit, static_argnames=("block_b",))
def robust_mixture_prediction(x, prepped, *, block_b=1024):
    """x: (B, input_dim) float32.  prepped: output of prepare_params()."""
    B, K = x.shape
    H = prepped["w1"].shape[1]
    N_pad = prepped["w3"].shape[1]
    N = prepped["b3"].shape[1]
    assert H % 128 == 0, "hidden_dim must be a multiple of 128 (LN over full dim)"

    # Batch tile: as big as block_b (amortize ~0.35us/step overhead) but capped
    # so the grid has >=2 parallel steps whenever B allows (v7x has 2 cores).
    TB = min(block_b, _round_up(max(_cdiv(B, 2), 8), 8))
    B_pad = _round_up(B, TB)
    if B_pad != B:
        x = jnp.pad(x, ((0, B_pad - B), (0, 0)))

    # Padded logit lanes get a huge negative bias -> exp() == 0 in the softmax.
    b3_p = jnp.pad(prepped["b3"], ((0, 0), (0, N_pad - N)),
                   constant_values=_NEG_INF)

    operands = (
        x,
        prepped["w1"], prepped["b1"], prepped["g1"], prepped["be1"],
        prepped["w2"], prepped["b2"], prepped["g2"], prepped["be2"],
        prepped["w3"], b3_p,
    )

    const = lambda i: (0, 0)            # weights stay VMEM-resident across grid
    # Constant-index operands only need a single buffer (halves their VMEM).
    resident = ({"pipeline_mode": pl.Buffered(buffer_count=1)}
                if hasattr(pl, "Buffered") else {})
    in_specs = [
        pl.BlockSpec((TB, K), lambda i: (i, 0)),                 # x tile (f32)
        pl.BlockSpec((K, H), const, **resident),                 # w1
        pl.BlockSpec((1, H), const, **resident),                 # b1
        pl.BlockSpec((1, H), const, **resident),                 # g1
        pl.BlockSpec((1, H), const, **resident),                 # be1
        pl.BlockSpec((H, H), const, **resident),                 # w2
        pl.BlockSpec((1, H), const, **resident),                 # b2
        pl.BlockSpec((1, H), const, **resident),                 # g2
        pl.BlockSpec((1, H), const, **resident),                 # be2
        pl.BlockSpec((H, N_pad), const, **resident),             # w3
        pl.BlockSpec((1, N_pad), const, **resident),             # b3 (padded)
    ]
    out_spec = pl.BlockSpec((TB, N), lambda i: (i, 0))           # unpadded out

    flops = 2 * B_pad * (K * H + H * H + H * N_pad)
    bytes_accessed = (B_pad * K * 4                               # x read
                      + 2 * (K * H + H * H + H * N_pad)           # bf16 weights
                      + 4 * (6 * H + N_pad)                       # f32 bias/LN
                      + B_pad * N * 4)                            # output write
    cost = pl.CostEstimate(flops=flops,
                           transcendentals=B_pad * N_pad,
                           bytes_accessed=bytes_accessed)

    out = pl.pallas_call(
        _mixture_kernel,
        out_shape=jax.ShapeDtypeStruct((B_pad, N), jnp.float32),
        grid_spec=pltpu.PrefetchScalarGridSpec(
            num_scalar_prefetch=0,
            grid=(B_pad // TB,),
            in_specs=in_specs,
            out_specs=out_spec,
        ),
        compiler_params=pltpu.CompilerParams(
            dimension_semantics=("parallel",),
            vmem_limit_bytes=_default_vmem_limit_bytes(),
        ),
        cost_estimate=cost,
    )(*operands)

    return out[:B] if B_pad != B else out


def init_params(key, input_dim, output_dim, hidden_dim):
    """Deterministic synthetic parameters (shapes match the PyTorch module)."""
    k1, k2, k3, k4, k5, k6 = jax.random.split(key, 6)
    scale = 0.02
    # Linear weights stored as (in, out) for the kernel's x @ W convention.
    w1 = scale * jax.random.normal(k1, (input_dim, hidden_dim), jnp.float32)
    w2 = scale * jax.random.normal(k2, (hidden_dim, hidden_dim), jnp.float32)
    w3 = scale * jax.random.normal(k3, (hidden_dim, output_dim), jnp.float32)
    return dict(
        w1=w1,
        b1=0.01 * jax.random.normal(k4, (1, hidden_dim), jnp.float32),
        g1=jnp.ones((1, hidden_dim), jnp.float32),
        be1=jnp.zeros((1, hidden_dim), jnp.float32),
        w2=w2,
        b2=0.01 * jax.random.normal(k5, (1, hidden_dim), jnp.float32),
        g2=jnp.ones((1, hidden_dim), jnp.float32),
        be2=jnp.zeros((1, hidden_dim), jnp.float32),
        w3=w3,
        b3=0.01 * jax.random.normal(k6, (1, output_dim), jnp.float32),
    )


def reference_forward(x, p):
    """Pure-JAX f32 reference mirroring the PyTorch eval-mode forward."""
    h = x @ p["w1"] + p["b1"]
    h = _layernorm(h, p["g1"], p["be1"])
    h = jnp.maximum(h, 0.0)
    res = h
    h2 = h @ p["w2"] + p["b2"]
    h2 = _layernorm(h2, p["g2"], p["be2"])
    h2 = jnp.maximum(h2, 0.0) + res
    logits = h2 @ p["w3"] + p["b3"]
    return jax.nn.softmax(logits, axis=-1)


if __name__ == "__main__":
    batch, input_dim, hidden_dim, output_dim = 8, 32, 128, 16

    key = jax.random.PRNGKey(0)
    kx, kp = jax.random.split(key)
    x = jax.random.normal(kx, (batch, input_dim), jnp.float32)
    params = init_params(kp, input_dim, output_dim, hidden_dim)

    prepped = prepare_params(params)              # one-time weight prep
    out = robust_mixture_prediction(x, prepped)
    out = jax.block_until_ready(out)

    ref = reference_forward(x, params)
    assert out.shape == (batch, output_dim)
    # bf16 MXU inputs -> loosened tolerance vs the pure-f32 reference.
    assert jnp.allclose(out, ref, atol=5e-3, rtol=5e-2), (
        float(jnp.max(jnp.abs(out - ref))))
    # Exact softmax divide: rows sum to 1 to f32 accuracy.
    assert jnp.allclose(jnp.sum(out, axis=-1), 1.0, atol=1e-4)

    print("KERNEL_OK")
</pallas_src>

<mosaic_0001>
module attributes {stable_mosaic.version = 11 : i64} {
  func.func @_mixture_kernel(%arg0: i32, %arg1: memref<8x32xf32, #tpu.memory_space<vmem>>, %arg2: memref<32x128xbf16, #tpu.memory_space<vmem>>, %arg3: memref<1x128xf32, #tpu.memory_space<vmem>>, %arg4: memref<1x128xf32, #tpu.memory_space<vmem>>, %arg5: memref<1x128xf32, #tpu.memory_space<vmem>>, %arg6: memref<128x128xbf16, #tpu.memory_space<vmem>>, %arg7: memref<1x128xf32, #tpu.memory_space<vmem>>, %arg8: memref<1x128xf32, #tpu.memory_space<vmem>>, %arg9: memref<1x128xf32, #tpu.memory_space<vmem>>, %arg10: memref<128x128xbf16, #tpu.memory_space<vmem>>, %arg11: memref<1x128xf32, #tpu.memory_space<vmem>>, %arg12: memref<8x16xf32, #tpu.memory_space<vmem>>) attributes {dimension_semantics = [#tpu.dimension_semantics<parallel>], iteration_bounds = array<i64: 1>, scalar_prefetch = 0 : i64, scratch_operands = 0 : i64, tpu.core_type = #tpu.core_type<tc>, window_params = [{transform_indices = @transform_0, window_bounds = array<i64: 8, 32>}, {pipeline_mode = #tpu.pipeline_mode<synchronous>, transform_indices = @transform_1, window_bounds = array<i64: 32, 128>}, {pipeline_mode = #tpu.pipeline_mode<synchronous>, transform_indices = @transform_2, window_bounds = array<i64: 1, 128>}, {pipeline_mode = #tpu.pipeline_mode<synchronous>, transform_indices = @transform_3, window_bounds = array<i64: 1, 128>}, {pipeline_mode = #tpu.pipeline_mode<synchronous>, transform_indices = @transform_4, window_bounds = array<i64: 1, 128>}, {pipeline_mode = #tpu.pipeline_mode<synchronous>, transform_indices = @transform_5, window_bounds = array<i64: 128, 128>}, {pipeline_mode = #tpu.pipeline_mode<synchronous>, transform_indices = @transform_6, window_bounds = array<i64: 1, 128>}, {pipeline_mode = #tpu.pipeline_mode<synchronous>, transform_indices = @transform_7, window_bounds = array<i64: 1, 128>}, {pipeline_mode = #tpu.pipeline_mode<synchronous>, transform_indices = @transform_8, window_bounds = array<i64: 1, 128>}, {pipeline_mode = #tpu.pipeline_mode<synchronous>, transform_indices = @transform_9, window_bounds = array<i64: 128, 128>}, {pipeline_mode = #tpu.pipeline_mode<synchronous>, transform_indices = @transform_10, window_bounds = array<i64: 1, 128>}, {transform_indices = @transform_11, window_bounds = array<i64: 8, 16>}]} {
    %c0 = arith.constant 0 : index
    %c0_0 = arith.constant 0 : index
    %0 = vector.load %arg1[%c0, %c0_0] : memref<8x32xf32, #tpu.memory_space<vmem>>, vector<8x32xf32>
    %1 = arith.truncf %0 : vector<8x32xf32> to vector<8x32xbf16>
    %c0_1 = arith.constant 0 : index
    %c0_2 = arith.constant 0 : index
    %2 = vector.load %arg2[%c0_1, %c0_2] : memref<32x128xbf16, #tpu.memory_space<vmem>>, vector<32x128xbf16>
    %cst = arith.constant dense<0.000000e+00> : vector<8x128xf32>
    %3 = tpu.matmul %1, %2, %cst {dimension_numbers = #tpu.dot_dimension_numbers<[1], [0], [0], [1], [0, 0, 1, 1], [], []>} : vector<8x32xbf16>, vector<32x128xbf16>, vector<8x128xf32> -> vector<8x128xf32>
    %c0_3 = arith.constant 0 : index
    %c0_4 = arith.constant 0 : index
    %4 = vector.load %arg3[%c0_3, %c0_4] : memref<1x128xf32, #tpu.memory_space<vmem>>, vector<1x128xf32>
    %5 = vector.broadcast %4 : vector<1x128xf32> to vector<8x128xf32>
    %6 = arith.addf %3, %5 : vector<8x128xf32>
    %c0_5 = arith.constant 0 : index
    %c0_6 = arith.constant 0 : index
    %7 = vector.load %arg4[%c0_5, %c0_6] : memref<1x128xf32, #tpu.memory_space<vmem>>, vector<1x128xf32>
    %c0_7 = arith.constant 0 : index
    %c0_8 = arith.constant 0 : index
    %8 = vector.load %arg5[%c0_7, %c0_8] : memref<1x128xf32, #tpu.memory_space<vmem>>, vector<1x128xf32>
    %cst_9 = arith.constant dense<0.000000e+00> : vector<8xf32>
    %9 = vector.multi_reduction <add>, %6, %cst_9 [1] : vector<8x128xf32> to vector<8xf32>
    %10 = vector.shape_cast %9 : vector<8xf32> to vector<8x1xf32>
    %cst_10 = arith.constant 1.280000e+02 : f32
    %11 = vector.broadcast %cst_10 : f32 to vector<8x1xf32>
    %12 = arith.divf %10, %11 : vector<8x1xf32>
    %13 = vector.broadcast %12 : vector<8x1xf32> to vector<8x128xf32>
    %14 = arith.subf %6, %13 : vector<8x128xf32>
    %15 = arith.mulf %14, %14 : vector<8x128xf32>
    %cst_11 = arith.constant dense<0.000000e+00> : vector<8xf32>
    %16 = vector.multi_reduction <add>, %15, %cst_11 [1] : vector<8x128xf32> to vector<8xf32>
    %17 = vector.shape_cast %16 : vector<8xf32> to vector<8x1xf32>
    %cst_12 = arith.constant 1.280000e+02 : f32
    %18 = vector.broadcast %cst_12 : f32 to vector<8x1xf32>
    %19 = arith.divf %17, %18 : vector<8x1xf32>
    %cst_13 = arith.constant 9.99999974E-6 : f32
    %20 = vector.broadcast %cst_13 : f32 to vector<8x1xf32>
    %21 = arith.addf %19, %20 : vector<8x1xf32>
    %22 = math.rsqrt %21 : vector<8x1xf32>
    %23 = vector.broadcast %12 : vector<8x1xf32> to vector<8x128xf32>
    %24 = arith.subf %6, %23 : vector<8x128xf32>
    %25 = vector.broadcast %22 : vector<8x1xf32> to vector<8x128xf32>
    %26 = arith.mulf %24, %25 : vector<8x128xf32>
    %27 = vector.broadcast %7 : vector<1x128xf32> to vector<8x128xf32>
    %28 = arith.mulf %26, %27 : vector<8x128xf32>
    %29 = vector.broadcast %8 : vector<1x128xf32> to vector<8x128xf32>
    %30 = arith.addf %28, %29 : vector<8x128xf32>
    %cst_14 = arith.constant 0.000000e+00 : f32
    %31 = vector.broadcast %cst_14 : f32 to vector<8x128xf32>
    %32 = arith.maximumf %30, %31 : vector<8x128xf32>
    %33 = arith.truncf %32 : vector<8x128xf32> to vector<8x128xbf16>
    %c0_15 = arith.constant 0 : index
    %c0_16 = arith.constant 0 : index
    %34 = vector.load %arg6[%c0_15, %c0_16] : memref<128x128xbf16, #tpu.memory_space<vmem>>, vector<128x128xbf16>
    %cst_17 = arith.constant dense<0.000000e+00> : vector<8x128xf32>
    %35 = tpu.matmul %33, %34, %cst_17 {dimension_numbers = #tpu.dot_dimension_numbers<[1], [0], [0], [1], [0, 0, 1, 1], [], []>} : vector<8x128xbf16>, vector<128x128xbf16>, vector<8x128xf32> -> vector<8x128xf32>
    %c0_18 = arith.constant 0 : index
    %c0_19 = arith.constant 0 : index
    %36 = vector.load %arg7[%c0_18, %c0_19] : memref<1x128xf32, #tpu.memory_space<vmem>>, vector<1x128xf32>
    %37 = vector.broadcast %36 : vector<1x128xf32> to vector<8x128xf32>
    %38 = arith.addf %35, %37 : vector<8x128xf32>
    %c0_20 = arith.constant 0 : index
    %c0_21 = arith.constant 0 : index
    %39 = vector.load %arg8[%c0_20, %c0_21] : memref<1x128xf32, #tpu.memory_space<vmem>>, vector<1x128xf32>
    %c0_22 = arith.constant 0 : index
    %c0_23 = arith.constant 0 : index
    %40 = vector.load %arg9[%c0_22, %c0_23] : memref<1x128xf32, #tpu.memory_space<vmem>>, vector<1x128xf32>
    %cst_24 = arith.constant dense<0.000000e+00> : vector<8xf32>
    %41 = vector.multi_reduction <add>, %38, %cst_24 [1] : vector<8x128xf32> to vector<8xf32>
    %42 = vector.shape_cast %41 : vector<8xf32> to vector<8x1xf32>
    %cst_25 = arith.constant 1.280000e+02 : f32
    %43 = vector.broadcast %cst_25 : f32 to vector<8x1xf32>
    %44 = arith.divf %42, %43 : vector<8x1xf32>
    %45 = vector.broadcast %44 : vector<8x1xf32> to vector<8x128xf32>
    %46 = arith.subf %38, %45 : vector<8x128xf32>
    %47 = arith.mulf %46, %46 : vector<8x128xf32>
    %cst_26 = arith.constant dense<0.000000e+00> : vector<8xf32>
    %48 = vector.multi_reduction <add>, %47, %cst_26 [1] : vector<8x128xf32> to vector<8xf32>
    %49 = vector.shape_cast %48 : vector<8xf32> to vector<8x1xf32>
    %cst_27 = arith.constant 1.280000e+02 : f32
    %50 = vector.broadcast %cst_27 : f32 to vector<8x1xf32>
    %51 = arith.divf %49, %50 : vector<8x1xf32>
    %cst_28 = arith.constant 9.99999974E-6 : f32
    %52 = vector.broadcast %cst_28 : f32 to vector<8x1xf32>
    %53 = arith.addf %51, %52 : vector<8x1xf32>
    %54 = math.rsqrt %53 : vector<8x1xf32>
    %55 = vector.broadcast %44 : vector<8x1xf32> to vector<8x128xf32>
    %56 = arith.subf %38, %55 : vector<8x128xf32>
    %57 = vector.broadcast %54 : vector<8x1xf32> to vector<8x128xf32>
    %58 = arith.mulf %56, %57 : vector<8x128xf32>
    %59 = vector.broadcast %39 : vector<1x128xf32> to vector<8x128xf32>
    %60 = arith.mulf %58, %59 : vector<8x128xf32>
    %61 = vector.broadcast %40 : vector<1x128xf32> to vector<8x128xf32>
    %62 = arith.addf %60, %61 : vector<8x128xf32>
    %cst_29 = arith.constant 0.000000e+00 : f32
    %63 = vector.broadcast %cst_29 : f32 to vector<8x128xf32>
    %64 = arith.maximumf %62, %63 : vector<8x128xf32>
    %65 = arith.extf %33 : vector<8x128xbf16> to vector<8x128xf32>
    %66 = arith.addf %64, %65 : vector<8x128xf32>
    %67 = arith.truncf %66 : vector<8x128xf32> to vector<8x128xbf16>
    %c0_30 = arith.constant 0 : index
    %c0_31 = arith.constant 0 : index
    %68 = vector.load %arg10[%c0_30, %c0_31] : memref<128x128xbf16, #tpu.memory_space<vmem>>, vector<128x128xbf16>
    %cst_32 = arith.constant dense<0.000000e+00> : vector<8x128xf32>
    %69 = tpu.matmul %67, %68, %cst_32 {dimension_numbers = #tpu.dot_dimension_numbers<[1], [0], [0], [1], [0, 0, 1, 1], [], []>} : vector<8x128xbf16>, vector<128x128xbf16>, vector<8x128xf32> -> vector<8x128xf32>
    %c0_33 = arith.constant 0 : index
    %c0_34 = arith.constant 0 : index
    %70 = vector.load %arg11[%c0_33, %c0_34] : memref<1x128xf32, #tpu.memory_space<vmem>>, vector<1x128xf32>
    %71 = vector.broadcast %70 : vector<1x128xf32> to vector<8x128xf32>
    %72 = arith.addf %69, %71 : vector<8x128xf32>
    %cst_35 = arith.constant dense<0xFF800000> : vector<8xf32>
    %73 = vector.multi_reduction <maximumf>, %72, %cst_35 [1] : vector<8x128xf32> to vector<8xf32>
    %74 = vector.shape_cast %73 : vector<8xf32> to vector<8x1xf32>
    %75 = vector.broadcast %74 : vector<8x1xf32> to vector<8x128xf32>
    %76 = arith.subf %72, %75 : vector<8x128xf32>
    %77 = math.exp %76 : vector<8x128xf32>
    %cst_36 = arith.constant dense<0.000000e+00> : vector<8xf32>
    %78 = vector.multi_reduction <add>, %77, %cst_36 [1] : vector<8x128xf32> to vector<8xf32>
    %79 = vector.shape_cast %78 : vector<8xf32> to vector<8x1xf32>
    %80 = vector.broadcast %79 : vector<8x1xf32> to vector<8x128xf32>
    %81 = arith.divf %77, %80 : vector<8x128xf32>
    %82 = vector.extract_strided_slice %81 {offsets = [0, 0], sizes = [8, 16], strides = [1, 1]} : vector<8x128xf32> to vector<8x16xf32>
    %c0_37 = arith.constant 0 : index
    %c0_38 = arith.constant 0 : index
    %83 = vector.load %arg12[%c0_37, %c0_38] : memref<8x16xf32, #tpu.memory_space<vmem>>, vector<8x16xf32>
    tpu.vector_store %arg12[%c0_37, %c0_38], %82 {strides = array<i32>} : memref<8x16xf32, #tpu.memory_space<vmem>>, vector<8x16xf32>,
    return
  }
  func.func @transform_0(%arg0: i32) -> (i32, i32) {
    %c0_i32 = arith.constant 0 : i32
    %c0_i32_0 = arith.constant 0 : i32
    return %arg0, %c0_i32 : i32, i32
  }
  func.func @transform_1(%arg0: i32) -> (i32, i32) {
    %c0_i32 = arith.constant 0 : i32
    %c0_i32_0 = arith.constant 0 : i32
    %c0_i32_1 = arith.constant 0 : i32
    return %c0_i32, %c0_i32_0 : i32, i32
  }
  func.func @transform_2(%arg0: i32) -> (i32, i32) {
    %c0_i32 = arith.constant 0 : i32
    %c0_i32_0 = arith.constant 0 : i32
    %c0_i32_1 = arith.constant 0 : i32
    return %c0_i32, %c0_i32_0 : i32, i32
  }
  func.func @transform_3(%arg0: i32) -> (i32, i32) {
    %c0_i32 = arith.constant 0 : i32
    %c0_i32_0 = arith.constant 0 : i32
    %c0_i32_1 = arith.constant 0 : i32
    return %c0_i32, %c0_i32_0 : i32, i32
  }
  func.func @transform_4(%arg0: i32) -> (i32, i32) {
    %c0_i32 = arith.constant 0 : i32
    %c0_i32_0 = arith.constant 0 : i32
    %c0_i32_1 = arith.constant 0 : i32
    return %c0_i32, %c0_i32_0 : i32, i32
  }
  func.func @transform_5(%arg0: i32) -> (i32, i32) {
    %c0_i32 = arith.constant 0 : i32
    %c0_i32_0 = arith.constant 0 : i32
    %c0_i32_1 = arith.constant 0 : i32
    return %c0_i32, %c0_i32_0 : i32, i32
  }
  func.func @transform_6(%arg0: i32) -> (i32, i32) {
    %c0_i32 = arith.constant 0 : i32
    %c0_i32_0 = arith.constant 0 : i32
    %c0_i32_1 = arith.constant 0 : i32
    return %c0_i32, %c0_i32_0 : i32, i32
  }
  func.func @transform_7(%arg0: i32) -> (i32, i32) {
    %c0_i32 = arith.constant 0 : i32
    %c0_i32_0 = arith.constant 0 : i32
    %c0_i32_1 = arith.constant 0 : i32
    return %c0_i32, %c0_i32_0 : i32, i32
  }
  func.func @transform_8(%arg0: i32) -> (i32, i32) {
    %c0_i32 = arith.constant 0 : i32
    %c0_i32_0 = arith.constant 0 : i32
    %c0_i32_1 = arith.constant 0 : i32
    return %c0_i32, %c0_i32_0 : i32, i32
  }
  func.func @transform_9(%arg0: i32) -> (i32, i32) {
    %c0_i32 = arith.constant 0 : i32
    %c0_i32_0 = arith.constant 0 : i32
    %c0_i32_1 = arith.constant 0 : i32
    return %c0_i32, %c0_i32_0 : i32, i32
  }
  func.func @transform_10(%arg0: i32) -> (i32, i32) {
    %c0_i32 = arith.constant 0 : i32
    %c0_i32_0 = arith.constant 0 : i32
    %c0_i32_1 = arith.constant 0 : i32
    return %c0_i32, %c0_i32_0 : i32, i32
  }
  func.func @transform_11(%arg0: i32) -> (i32, i32) {
    %c0_i32 = arith.constant 0 : i32
    %c0_i32_0 = arith.constant 0 : i32
    return %arg0, %c0_i32 : i32, i32
  }
}

</mosaic_0001>

<bundles_post_ra>
// kernel: robust_mixture_prediction.1
= control target key start
LH: loop header
LB: loop body
LE: loop exit
PB: predicated region body
PF: predicated region fallthrough
CT: control target
= control target key end

     0   :  { %16 = vsyncpa [#allocation3], 0  ;;  %s984_s0 = inlined_call_operand.hbm [shape: f32[8,32], index: 0, kind: input, shape index: {}]   ;;  %s985_s1 = inlined_call_operand.vmem [shape: bf16[32,128], index: 1, kind: input, shape index: {}]   ;;  %s986_s2 = inlined_call_operand.vmem [shape: f32[1,128], index: 2, kind: input, shape index: {}]   ;;  %s987_s3 = inlined_call_operand.hbm [shape: f32[1,128], index: 3, kind: input, shape index: {}]   ;;  %s988_s4 = inlined_call_operand.hbm [shape: f32[1,128], index: 4, kind: input, shape index: {}]   ;;  %s989_s5 = inlined_call_operand.hbm [shape: bf16[128,128], index: 5, kind: input, shape index: {}]   ;;  %s990_s6 = inlined_call_operand.hbm [shape: f32[1,128], index: 6, kind: input, shape index: {}]   ;;  %s991_s7 = inlined_call_operand.hbm [shape: f32[1,128], index: 7, kind: input, shape index: {}]   ;;  %s992_s8 = inlined_call_operand.hbm [shape: f32[1,128], index: 8, kind: input, shape index: {}]   ;;  %s993_s9 = inlined_call_operand.hbm [shape: bf16[128,128], index: 9, kind: input, shape index: {}]   ;;  %s994_s10 = inlined_call_operand.vmem [shape: f32[1,128], index: 10, kind: input, shape index: {}]   ;;  %s995_s11 = inlined_call_operand.hbm [shape: f32[8,16], index: 11, kind: output, shape index: {}]  }
   0x1   :  { %17 = vsyncpa [#allocation6], 0 }
   0x2   :  { %18 = vsyncpa [#allocation9], 0 }
   0x3   :  { %19 = vsyncpa [#allocation12], 0 }
   0x4   :  { %20 = vsyncpa [#allocation15], 0 }
   0x5   :  { %21 = vsyncpa [#allocation4], 0  ;;  %s845_s17 = smov [#allocation5]   ;;  %s846_s19 = smov [#allocation8]  }
   0x6   :  { %s42_s18 = sshll.u32 %s845_s17, 4  ;;  %s61_s20 = sshll.u32 %s846_s19, 4  ;;  %s43_s18 = int_to_ptr.vmem [resolvable:$true] %s42_s18  ;;  %s62_s20 = int_to_ptr.vmem [resolvable:$true] %s61_s20 }
   0x7   :  { %s661_s21 = scalar_lea.vmem %s43_s18, 16  ;;  %s665_s22 = scalar_lea.vmem %s43_s18, 32 }
   0x8   :  { %p662_p0 = scmp.ne.s32.totalorder %s43_s18, %s661_s21  ;;  %p666_p1 = scmp.lt.s32.totalorder %s43_s18, %s43_s18 }
   0x9   :  { %p667_p2 = scmp.lt.s32.totalorder %s665_s22, %s661_s21 }
   0xb   :  { %p668_p3 = por %p667_p2, %p666_p1 }
   0xd   :  { %p669_p4 = pnand %p668_p3, %p662_p0 }
   0xf   :  { %672 = shalt.err (!%p669_p4)
}
  0x10   :  { %45 = dma.hbm_to_vmem [thread:$0]  %s987_s3, 16, %s43_s18, [#allocation6]  }
  0x11   :  { %s681_s25 = scalar_lea.vmem %s62_s20, 1024  ;;  %p686_p6 = scmp.lt.s32.totalorder %s62_s20, %s62_s20 }
  0x12   :  { %p682_p5 = scmp.ne.s32.totalorder %s62_s20, %s681_s25  ;;  %p687_p7 = scmp.lt.s32.totalorder %s681_s25, %s681_s25 }
  0x14   :  { %p688_p8 = por %p687_p7, %p686_p6 }
  0x16   :  { %p689_p9 = pnand %p688_p8, %p682_p5 }
  0x18   :  { %692 = shalt.err (!%p689_p9)
}
  0x19   :  { %s847_s26 = smov 64   ;;  %s848_s27 = smov 4  }
  0x1a   :  { %67 = dma.hbm_to_vmem [thread:$0]  %s989_s5, 1024, %s62_s20, [#allocation9], %s847_s26, %s847_s26, %s848_s27  }
  0x1b   :  { %s849_s30 = smov [#allocation11]   ;;  %s850_s13 = smov [#allocation2]  }
  0x1c   :  { %s84_s12 = sshll.u32 %s849_s30, 4  ;;  %s28_s3 = sshll.u32 %s850_s13, 4  ;;  %s85_s12 = int_to_ptr.vmem [resolvable:$true] %s84_s12  ;;  %s29_s3 = int_to_ptr.vmem [resolvable:$true] %s28_s3 }
  0x1d   :  { %s701_s14 = scalar_lea.vmem %s85_s12, 16  ;;  %s705_s15 = scalar_lea.vmem %s85_s12, 32 }
  0x1e   :  { %p702_p10 = scmp.ne.s32.totalorder %s85_s12, %s701_s14  ;;  %p706_p11 = scmp.lt.s32.totalorder %s85_s12, %s85_s12 }
  0x1f   :  { %p707_p12 = scmp.lt.s32.totalorder %s705_s15, %s701_s14 }
  0x21   :  { %p708_p13 = por %p707_p12, %p706_p11 }
  0x23   :  { %p709_p0 = pnand %p708_p13, %p702_p10 }
  0x25   :  { %712 = shalt.err (!%p709_p0)
}
  0x26   :  { %87 = dma.hbm_to_vmem [thread:$0]  %s991_s7, 16, %s85_s12, [#allocation12]  }
  0x27   :  { %s721_s18 = scalar_lea.vmem %s29_s3, 128  ;;  %p726_p2 = scmp.lt.s32.totalorder %s29_s3, %s29_s3 }
  0x28   :  { %p722_p1 = scmp.ne.s32.totalorder %s29_s3, %s721_s18  ;;  %p727_p3 = scmp.lt.s32.totalorder %s721_s18, %s721_s18 }
  0x2a   :  { %p728_p4 = por %p727_p3, %p726_p2 }
  0x2c   :  { %p729_p5 = pnand %p728_p4, %p722_p1 }
  0x2e   :  { %732 = shalt.err (!%p729_p5)
}
  0x2f   :  { %31 = dma.hbm_to_vmem [thread:$0]  %s984_s0, 128, %s29_s3, [#allocation3]  }
  0x30   :  { %s851_s20 = smov [#allocation7]   ;;  %s852_s22 = smov [#allocation10]  }
  0x31   :  { %s52_s21 = sshll.u32 %s851_s20, 4  ;;  %s74_s23 = sshll.u32 %s852_s22, 4  ;;  %s53_s21 = int_to_ptr.vmem [resolvable:$true] %s52_s21  ;;  %s75_s23 = int_to_ptr.vmem [resolvable:$true] %s74_s23 }
  0x32   :  { %s741_s24 = scalar_lea.vmem %s53_s21, 16  ;;  %s745_s7 = scalar_lea.vmem %s53_s21, 32 }
  0x33   :  { %p742_p6 = scmp.ne.s32.totalorder %s53_s21, %s741_s24  ;;  %p746_p7 = scmp.lt.s32.totalorder %s53_s21, %s53_s21 }
  0x34   :  { %p747_p8 = scmp.lt.s32.totalorder %s745_s7, %s741_s24 }
  0x36   :  { %p748_p9 = por %p747_p8, %p746_p7 }
  0x38   :  { %p749_p10 = pnand %p748_p9, %p742_p6 }
  0x3a   :  { %752 = shalt.err (!%p749_p10)
}
  0x3b   :  { %55 = dma.hbm_to_vmem [thread:$0]  %s988_s4, 16, %s53_s21, [#allocation6]  }
  0x3c   :  { %s761_s29 = scalar_lea.vmem %s75_s23, 16  ;;  %s765_s0 = scalar_lea.vmem %s75_s23, 32 }
  0x3d   :  { %p762_p11 = scmp.ne.s32.totalorder %s75_s23, %s761_s29  ;;  %p766_p12 = scmp.lt.s32.totalorder %s75_s23, %s75_s23 }
  0x3e   :  { %p767_p13 = scmp.lt.s32.totalorder %s765_s0, %s761_s29 }
  0x40   :  { %p768_p0 = por %p767_p13, %p766_p12 }
  0x42   :  { %p769_p1 = pnand %p768_p0, %p762_p11 }
  0x44   :  { %772 = shalt.err (!%p769_p1)
}
  0x45   :  { %77 = dma.hbm_to_vmem [thread:$0]  %s990_s6, 16, %s75_s23, [#allocation9]  }
  0x46   :  { %s853_s13 = smov [#allocation13]   ;;  %s854_s14 = smov [#allocation14]  }
  0x47   :  { %s94_s3 = sshll.u32 %s853_s13, 4  ;;  %s103_s15 = sshll.u32 %s854_s14, 4  ;;  %s95_s3 = int_to_ptr.vmem [resolvable:$true] %s94_s3  ;;  %s104_s15 = int_to_ptr.vmem [resolvable:$true] %s103_s15 }
  0x48   :  { %s781_s16 = scalar_lea.vmem %s95_s3, 16  ;;  %s785_s4 = scalar_lea.vmem %s95_s3, 32 }
  0x49   :  { %p782_p2 = scmp.ne.s32.totalorder %s95_s3, %s781_s16  ;;  %p786_p3 = scmp.lt.s32.totalorder %s95_s3, %s95_s3 }
  0x4a   :  { %p787_p4 = scmp.lt.s32.totalorder %s785_s4, %s781_s16 }
  0x4c   :  { %p788_p5 = por %p787_p4, %p786_p3 }
  0x4e   :  { %p789_p6 = pnand %p788_p5, %p782_p2 }
  0x50   :  { %792 = shalt.err (!%p789_p6)
}
  0x51   :  { %97 = dma.hbm_to_vmem [thread:$0]  %s992_s8, 16, %s95_s3, [#allocation12]  }
  0x52   :  { %s801_s5 = scalar_lea.vmem %s104_s15, 1024  ;;  %p806_p8 = scmp.lt.s32.totalorder %s104_s15, %s104_s15 }
  0x53   :  { %p802_p7 = scmp.ne.s32.totalorder %s104_s15, %s801_s5  ;;  %p807_p9 = scmp.lt.s32.totalorder %s801_s5, %s801_s5 }
  0x55   :  { %p808_p10 = por %p807_p9, %p806_p8 }
  0x57   :  { %p809_p11 = pnand %p808_p10, %p802_p7 }
  0x59   :  { %812 = shalt.err (!%p809_p11)
}
  0x5a   :  { %109 = dma.hbm_to_vmem [thread:$0]  %s993_s9, 1024, %s104_s15, [#allocation15], %s847_s26, %s847_s26, %s848_s27  }
  0x5b   :  { %833 = dma.done.wait [#allocation3], 128  }
  0x5c   :  { %834 = vsyncadd [#allocation3], 4294967168 }
  0x5d   :  { %835 = dma.done.wait [#allocation6], 32  }
  0x5e   :  { %836 = vsyncadd [#allocation6], 4294967264 }
  0x5f   :  { %837 = dma.done.wait [#allocation9], 1040  }
  0x60   :  { %838 = vsyncadd [#allocation9], 4294966256 }
  0x61   :  { %839 = dma.done.wait [#allocation12], 32  }
  0x62   :  { %840 = vsyncadd [#allocation12], 4294967264 }
  0x63   :  { %841 = dma.done.wait [#allocation15], 1024  }
  0x64   :  { %842 = vsyncadd [#allocation15], 4294966272  ;;  %v855_v0 = vmov 0.0   ;;  %vm856_vm0 = vmmov 0   ;;  %v627_v1 = vld [vmem:[%s985_s1 + $0x8] sm:$0xff]   ;;  %v628_v2 = vld [vmem:[%s985_s1] sm:$0xff]  }
  0x65   :  { %566 = vmatprep.subr.bf16.mxu0 %v855_v0  ;;  %570 = vmatprep.mubr.msk.bf16.mxu0 %vm856_vm0, %v855_v0  ;;  %v137_v3 = vld [vmem:[#allocation2] sm:$0xff]  ;;  %vm162_vm1 = vcmask 261120   ;;  %v631_v17 = vld [vmem:[#allocation8 + $0x28] sm:$0xff]   ;;  %v632_v18 = vld [vmem:[#allocation8 + $0x20] sm:$0xff]   ;;  %s857_s22 = smov [#allocation16]   ;;  %vm498_vm2 = vcmask 130048  }
  0x66   :  { %574 = vmatprep.subr.bf16.mxu1 %v855_v0  ;;  %590 = vmatprep.mubr.msk.bf16.mxu1 %vm856_vm0, %v855_v0  ;;  %v138_v4 = vpack.c.bf16 %v137_v3, %v137_v3  ;;  %v519_v5 = vld [vmem:[%s986_s2] ss:$0 sm:$0xff]  ;;  %v629_v11 = vld [vmem:[#allocation8 + $0x38] sm:$0xff]   ;;  %v635_v21 = vld [vmem:[#allocation8 + $0x8] sm:$0xff]   ;;  %s506_s23 = sshll.u32 %s857_s22, 4  ;;  %s507_s23 = int_to_ptr.vmem [resolvable:$true] %s506_s23 }
  0x67   :  { %567 = vmatpush3.bf16.msra.mxu0 %v627_v1  ;;  %575 = vmatpush3.bf16.msra.mxu1 %v629_v11  ;;  %v630_v16 = vld [vmem:[#allocation8 + $0x30] sm:$0xff]   ;;  %v633_v19 = vld [vmem:[#allocation8 + $0x18] sm:$0xff]   ;;  %v636_v22 = vld [vmem:[#allocation8] sm:$0xff]   ;;  %p818_p13 = scmp.lt.s32.totalorder %s507_s23, %s507_s23 }
  0x68   :  { %568 = vmatprep.subr.bf16.mxu0 %v855_v0  ;;  %576 = vmatprep.subr.bf16.mxu1 %v855_v0  ;;  %v634_v20 = vld [vmem:[#allocation8 + $0x10] sm:$0xff]   ;;  %v523_v27 = vld [vmem:[#allocation5] ss:$0 sm:$0xff]  ;;  %v524_v29 = vld [vmem:[#allocation7] ss:$0 sm:$0xff] }
  0x69   :  { %v525_v34 = vld [vmem:[#allocation10] ss:$0 sm:$0xff]  ;;  %v638_v45 = vld [vmem:[#allocation14 + $0x30] sm:$0xff]   ;;  %v639_v46 = vld [vmem:[#allocation14 + $0x28] sm:$0xff]  }
  0x6a   :  { %v637_v40 = vld [vmem:[#allocation14 + $0x38] sm:$0xff]   ;;  %v640_v47 = vld [vmem:[#allocation14 + $0x20] sm:$0xff]   ;;  %v642_v49 = vld [vmem:[#allocation14 + $0x10] sm:$0xff]  }
  0x6b   :  { %569 = vmatpush3.bf16.msra.mxu0 %v628_v2  ;;  %577 = vmatpush3.bf16.msra.mxu1 %v630_v16  ;;  %v641_v48 = vld [vmem:[#allocation14 + $0x18] sm:$0xff]   ;;  %v643_v50 = vld [vmem:[#allocation14 + $0x8] sm:$0xff]   ;;  %v644_v51 = vld [vmem:[#allocation14] sm:$0xff]  }
  0x6c   :  { %594 = vmatprep.subr.bf16.mxu0 %v855_v0  ;;  %578 = vmatprep.subr.bf16.mxu1 %v855_v0  ;;  %v534_v56 = vld [vmem:[#allocation11] ss:$0 sm:$0xff]  ;;  %v535_v58 = vld [vmem:[#allocation13] ss:$0 sm:$0xff] }
  0x6e   :  { %571 = vmatmul.mubr.msk.bf16.vlgmr.msra.gmra.mxu0 %vm162_vm1, %v138_v4 }
  0x6f   :  { %610 = vmatprep.mubr.msk.bf16.mxu0 %vm856_vm0, %v855_v0  ;;  %579 = vmatpush3.bf16.msra.mxu1 %v631_v17 }
  0x70   :  { %580 = vmatprep.subr.bf16.mxu1 %v855_v0  ;;  %595 = vmatpush3.bf16.msra.mxu0 %v637_v40 }
  0x71   :  { %596 = vmatprep.subr.bf16.mxu0 %v855_v0 }
  0x73   :  { %581 = vmatpush3.bf16.msra.mxu1 %v632_v18 }
  0x74   :  { %582 = vmatprep.subr.bf16.mxu1 %v855_v0  ;;  %597 = vmatpush3.bf16.msra.mxu0 %v638_v45 }
  0x75   :  { %598 = vmatprep.subr.bf16.mxu0 %v855_v0 }
  0x77   :  { %583 = vmatpush3.bf16.msra.mxu1 %v633_v19 }
  0x78   :  { %584 = vmatprep.subr.bf16.mxu1 %v855_v0  ;;  %599 = vmatpush3.bf16.msra.mxu0 %v639_v46 }
  0x79   :  { %600 = vmatprep.subr.bf16.mxu0 %v855_v0 }
  0x7b   :  { %585 = vmatpush3.bf16.msra.mxu1 %v634_v20 }
  0x7c   :  { %586 = vmatprep.subr.bf16.mxu1 %v855_v0  ;;  %601 = vmatpush3.bf16.msra.mxu0 %v640_v47 }
  0x7d   :  { %602 = vmatprep.subr.bf16.mxu0 %v855_v0 }
  0x7f   :  { %587 = vmatpush3.bf16.msra.mxu1 %v635_v21 }
  0x80   :  { %588 = vmatprep.subr.bf16.mxu1 %v855_v0  ;;  %603 = vmatpush3.bf16.msra.mxu0 %v641_v48 }
  0x81   :  { %604 = vmatprep.subr.bf16.mxu0 %v855_v0 }
  0x83   :  { %589 = vmatpush3.bf16.msra.mxu1 %v636_v22 }
  0x84   :  { %605 = vmatpush3.bf16.msra.mxu0 %v642_v49 }
  0x85   :  { %606 = vmatprep.subr.bf16.mxu0 %v855_v0 }
  0x88   :  { %607 = vmatpush3.bf16.msra.mxu0 %v643_v50 }
  0x89   :  { %608 = vmatprep.subr.bf16.mxu0 %v855_v0  ;;  %v536_v0 = vld [vmem:[%s994_s10] ss:$0 sm:$0xff]  ;;  %s813_s10 = scalar_lea.vmem %s507_s23, 128 }
  0x8a   :  { %p814_p12 = scmp.ne.s32.totalorder %s507_s23, %s813_s10  ;;  %p819_p0 = scmp.lt.s32.totalorder %s813_s10, %s813_s10 }
  0x8c   :  { %609 = vmatpush3.bf16.msra.mxu0 %v644_v51  ;;  %p820_p1 = por %p819_p0, %p818_p13 }
  0x8e   :  { %p821_p2 = pnand %p820_p1, %p814_p12 }
 0x12e   :  { %v200_v6 = vpop.f32.mrf.mxu0 }
 0x12f   :  { %v201_v7 = vadd.f32 %v519_v5, %v200_v6 }
 0x130   :  { %v572_v8 = vpop.f32.mrf.mxu0 }
 0x131   :  { %208 = vadd.xlane.f32.xlu0 %v201_v7 }
 0x132   :  { %v203_v9 = vpop.f32.mrf.mxu0 }
 0x134   :  { %v573_v10 = vpop.f32.mrf.mxu0 }
 0x1ba   :  { %v209_v12 = vpop.xlane.xlu0 %208 }
 0x1bb   :  { %v211_v13 = vmul.f32 0.0078125, %v209_v12 }
 0x1bd   :  { %v212_v14 = vsub.f32 %v201_v7, %v211_v13 }
 0x1bf   :  { %v213_v15 = vmul.f32 %v212_v14, %v212_v14 }
 0x1c1   :  { %214 = vadd.xlane.f32.xlu0 %v213_v15 }
 0x24a   :  { %v215_v23 = vpop.xlane.xlu0 %214 }
 0x24b   :  { %v216_v24 = vmul.f32 0.0078125, %v215_v23 }
 0x24d   :  { %v217_v25 = vadd.f32 1e-05, %v216_v24 }
 0x24f   :  { %645 = vrsqrt.f32 %v217_v25 }
 0x25c   :  { %v646_v26 = vpop.eup %645 }
 0x25d   :  { %v219_v28 = vmul.f32 %v646_v26, %v212_v14 }
 0x25f   :  { %v226_v30 = vmul.f32 %v523_v27, %v219_v28 }
 0x261   :  { %v233_v31 = vadd.f32 %v524_v29, %v226_v30 }
 0x263   :  { %v234_v32 = vmax.f32 %v233_v31, 0.0 }
 0x265   :  { %v235_v33 = vpack.c.bf16 %v234_v32, %v234_v32 }
 0x267   :  { %591 = vmatmul.mubr.bf16.vlgmr.msra.gmra.mxu1 %v235_v33  ;;  %v375_v61 = vunpack.c.l.bf16 %v235_v33 }
 0x327   :  { %v341_v35 = vpop.f32.mrf.mxu1 }
 0x328   :  { %v342_v36 = vadd.f32 %v525_v34, %v341_v35 }
 0x329   :  { %v592_v37 = vpop.f32.mrf.mxu1 }
 0x32a   :  { %349 = vadd.xlane.f32.xlu1 %v342_v36 }
 0x32b   :  { %v344_v38 = vpop.f32.mrf.mxu1 }
 0x32d   :  { %v593_v39 = vpop.f32.mrf.mxu1 }
 0x3b3   :  { %v350_v41 = vpop.xlane.xlu1 %349 }
 0x3b4   :  { %v351_v42 = vmul.f32 0.0078125, %v350_v41 }
 0x3b6   :  { %v352_v43 = vsub.f32 %v342_v36, %v351_v42 }
 0x3b8   :  { %v353_v44 = vmul.f32 %v352_v43, %v352_v43 }
 0x3ba   :  { %354 = vadd.xlane.f32.xlu1 %v353_v44 }
 0x443   :  { %v355_v52 = vpop.xlane.xlu1 %354 }
 0x444   :  { %v356_v53 = vmul.f32 0.0078125, %v355_v52 }
 0x446   :  { %v357_v54 = vadd.f32 1e-05, %v356_v53 }
 0x448   :  { %647 = vrsqrt.f32 %v357_v54 }
 0x455   :  { %v648_v55 = vpop.eup %647 }
 0x456   :  { %v359_v57 = vmul.f32 %v648_v55, %v352_v43 }
 0x458   :  { %v366_v59 = vmul.f32 %v534_v56, %v359_v57 }
 0x45a   :  { %v373_v60 = vadd.f32 %v535_v58, %v366_v59 }
 0x45c   :  { %v374_v62 = vmax.f32 %v373_v60, 0.0 }
 0x45e   :  { %v376_v63 = vadd.f32 %v375_v61, %v374_v62 }
 0x460   :  { %v377_v1 = vpack.c.bf16 %v376_v63, %v376_v63 }
 0x462   :  { %611 = vmatmul.mubr.bf16.vlgmr.msra.gmra.mxu0 %v377_v1 }
 0x522   :  { %v483_v2 = vpop.f32.mrf.mxu0 }
 0x523   :  { %v484_v3 = vadd.f32 %v536_v0, %v483_v2 }
 0x524   :  { %v612_v4 = vpop.f32.mrf.mxu0 }
 0x525   :  { %489 = vmax.xlane.f32.xlu0 %v484_v3 }
 0x526   :  { %v486_v5 = vpop.f32.mrf.mxu0 }
 0x528   :  { %v613_v6 = vpop.f32.mrf.mxu0 }
 0x5ae   :  { %v490_v7 = vpop.xlane.xlu0 %489 }
 0x5af   :  { %v491_v8 = vsub.f32 %v484_v3, %v490_v7 }
 0x5b1   :  { %v492_v9 = vmul.f32 1.442695, %v491_v8 }
 0x5b3   :  { %649 = vpow2.f32 %v492_v9 }
 0x5c0   :  { %v650_v10 = vpop.eup %649 }
 0x5c1   :  { %494 = vadd.xlane.f32.xlu1 %v650_v10 }
 0x64a   :  { %v495_v11 = vpop.xlane.xlu1 %494 }
 0x64b   :  { %651 = vrcp.f32 %v495_v11 }
 0x658   :  { %v652_v12 = vpop.eup %651 }
 0x659   :  { %v497_v13 = vmul.f32 %v652_v12, %v650_v10 }
 0x65b   :  { %499 = vst.msk [vmem:[#allocation16] sm:$0xff] %vm498_vm2, %v497_v13 }
 0x65c   :  { %824 = shalt.err (!%p821_p2)
}
 0x65d   :  { %509 = dma.vmem_to_hbm [thread:$0]  %s507_s23, 128, %s995_s11, [#allocation4]  }
 0x65e   :  { %843 = dma.done.wait [#allocation4], 128  }
 0x65f   :  { %844 = vsyncadd [#allocation4], 4294967168 }
 0x660   :  { %513 = vsyncpa [#allocation3], 1 }
 0x661   :  { %514 = vsyncpa [#allocation6], 1 }
 0x662   :  { %515 = vsyncpa [#allocation9], 1 }
 0x663   :  { %516 = vsyncpa [#allocation12], 1 }
 0x664   :  { %517 = vsyncpa [#allocation15], 1 }
 0x665   :  { %518 = vsyncpa [#allocation4], 1 }

</bundles_post_ra>
